<compile_context>
chip_gen: v5e
topology: v5e:2x2
jax: 0.10.0
libtpu: 0.0.40
codegen_flags: <defaults>
</compile_context>

<pallas_src>
import jax
import jax.numpy as jnp
import numpy as np
from jax.experimental import pallas as pl
from jax.experimental.pallas import tpu as pltpu  # noqa: F401  (TPU backend)

# ----------------------------- model dims -----------------------------------
B = 2          # batch
S = 8          # sequence length
D = 32         # hidden_size (embed_dim)
H = 4          # num attention heads
DH = D // H    # head dim
M = 4 * D      # MLP hidden (intermediate) size
P = 16         # projection_dim
T = B * S      # total tokens per call
LN_EPS = 1e-5
LANES = 128

# ----------------- packed parameter slab row offsets (8-aligned) -------------
R_WQKV = 0              # (D, 3D)   fused QKV weight (scale folded into Wq)
R_WO   = R_WQKV + D     # (D, D)    attention output projection
R_W1   = R_WO + D       # (D, M)    MLP in
R_W2T  = R_W1 + D       # (D, M)    MLP out, stored TRANSPOSED
R_WP   = R_W2T + D      # (D, P)    final projection (bias-free)
R_BQKV = R_WP + D       # (1, 3D)   fused QKV bias (scale folded into bq)
R_B1   = R_BQKV + 8     # (1, M)
R_VEC  = R_B1 + 8       # 8 rows: ln1w ln1b ln2w ln2b lnfw lnfb bo b2   (width D)
R_MASK = R_VEC + 8      # (H*T, D)  head block-diagonal 0/1 mask
R_BIAS = R_MASK + H * T # (T, H*T)  batch block-diagonal additive bias (0 / -1e30)
R_TOT  = R_BIAS + T     # = 264 rows  -> slab is (264, 128) f32  (~135 KB, one DMA)

# advisory cost estimate for XLA's scheduler
_FLOPS = (2 * T * D * (3 * D)        # fused QKV
          + 2 * T * D * (H * T)      # scores
          + 2 * T * (H * T) * D * 2  # ctx + per-head denom
          + 2 * T * D * D            # attention output proj
          + 2 * T * D * M * 2        # MLP
          + 2 * T * D * P)           # final projection
_TRANS = T * H * T + T * M + 3 * T + T * D
_BYTES = 4 * (T * D + R_TOT * LANES + T * P)


# ------------------------------ Pallas kernel --------------------------------
def encoder_proj_kernel(x_ref,        # (T, D)        activations
                        slab_ref,     # (R_TOT, 128)  packed params + constants
                        o_ref):       # (T, P)
    x = x_ref[...]                                                      # (T, D) f32

    def ln(t, row):
        w = slab_ref[R_VEC + row:R_VEC + row + 1, 0:D]                  # (1, D)
        b = slab_ref[R_VEC + row + 1:R_VEC + row + 2, 0:D]              # (1, D)
        mu = jnp.mean(t, axis=-1, keepdims=True)
        var = jnp.mean((t - mu) ** 2, axis=-1, keepdims=True)
        return (t - mu) * jax.lax.rsqrt(var + LN_EPS) * w + b

    # ---- self-attention block (pre-LN), lane-packed block-diagonal form ----
    h = ln(x, 0)
    wqkv = slab_ref[R_WQKV:R_WQKV + D, 0:3 * D]                         # (D, 3D)
    bqkv = slab_ref[R_BQKV:R_BQKV + 1, 0:3 * D]                         # (1, 3D)
    qkv = jnp.dot(h, wqkv, preferred_element_type=jnp.float32) + bqkv   # (T, 3D)
    q = qkv[:, 0:D]                    # softmax scale pre-folded into Wq/bq
    k = qkv[:, D:2 * D]
    v = qkv[:, 2 * D:3 * D]

    head_mask = slab_ref[R_MASK:R_MASK + H * T, 0:D]                    # (H*T, D)
    attn_bias = slab_ref[R_BIAS:R_BIAS + T, 0:H * T]                    # (T, H*T)

    k_blk = jnp.concatenate([k] * H, axis=0) * head_mask                # (H*T, D)
    v_blk = jnp.concatenate([v] * H, axis=0) * head_mask                # (H*T, D)

    # scores[i, h*T + t] = q_h[i] . k_h[t]   (one lane-dense 64-wide matmul)
    s = jax.lax.dot_general(q, k_blk, (((1,), (1,)), ((), ())),
                            preferred_element_type=jnp.float32)         # (T, H*T)
    s = s + attn_bias                            # cross-batch keys -> -1e30
    s = s - jnp.max(s, axis=-1, keepdims=True)   # row const; per-block invariant
    p = jnp.exp(s)                                                      # (T, H*T)

    ctx = jnp.dot(p, v_blk, preferred_element_type=jnp.float32)         # (T, D)
    den = jnp.dot(p, head_mask, preferred_element_type=jnp.float32)     # (T, D)
    a = ctx * pl.reciprocal(den, approx=True)      # heads already concatenated

    wo = slab_ref[R_WO:R_WO + D, 0:D]                                   # (D, D)
    bo = slab_ref[R_VEC + 6:R_VEC + 7, 0:D]                             # (1, D)
    x = x + jnp.dot(a, wo, preferred_element_type=jnp.float32) + bo

    # ---- MLP block (pre-LN) ----
    h = ln(x, 2)
    w1 = slab_ref[R_W1:R_W1 + D, 0:M]                                   # (D, M)
    b1 = slab_ref[R_B1:R_B1 + 1, 0:M]                                   # (1, M)
    h = jnp.dot(h, w1, preferred_element_type=jnp.float32) + b1         # (T, M)
    h = jax.nn.gelu(h, approximate=True)
    w2t = slab_ref[R_W2T:R_W2T + D, 0:M]                                # (D, M)
    b2 = slab_ref[R_VEC + 7:R_VEC + 8, 0:D]                             # (1, D)
    h = jax.lax.dot_general(h, w2t, (((1,), (1,)), ((), ())),
                            preferred_element_type=jnp.float32) + b2    # (T, D)
    x = x + h

    # ---- final encoder LayerNorm + bias-free projection ----
    x = ln(x, 4)
    wp = slab_ref[R_WP:R_WP + D, 0:P]                                   # (D, P)
    o_ref[...] = jnp.dot(x, wp, preferred_element_type=jnp.float32)


# ------------------------------ wrapper ---------------------------------------
def pack_params(params):
    """One-time repack of the canonical param tuple into a single lane-padded slab."""
    (ln1w, ln1b, wq, bq, wk, bk, wv, bv, wo, bo,
     ln2w, ln2b, w1, b1, w2, b2, lnfw, lnfb, wp) = params
    scale = 1.0 / (DH ** 0.5)

    slab = np.zeros((R_TOT, LANES), np.float32)

    def put(row, arr):
        a = np.asarray(arr, np.float32)
        slab[row:row + a.shape[0], 0:a.shape[1]] = a

    put(R_WQKV, jnp.concatenate([wq * scale, wk, wv], axis=1))   # (D, 3D)
    put(R_WO, wo)
    put(R_W1, w1)
    put(R_W2T, jnp.transpose(w2))                                # stored transposed
    put(R_WP, wp)
    put(R_BQKV, jnp.concatenate([bq * scale, bk, bv], axis=1))   # (1, 3D)
    put(R_B1, b1)
    put(R_VEC, jnp.concatenate([ln1w, ln1b, ln2w, ln2b, lnfw, lnfb, bo, b2], axis=0))

    # constant head block-diagonal mask: 1 where column d belongs to head (row // T)
    head_mask = (np.arange(H * T)[:, None] // T == np.arange(D)[None, :] // DH)
    put(R_MASK, head_mask.astype(np.float32))

    # constant batch block-diagonal additive bias, tiled across the H head blocks
    bias_tt = np.where(np.arange(T)[:, None] // S == np.arange(T)[None, :] // S,
                       0.0, -1e30).astype(np.float32)            # (T, T)
    put(R_BIAS, np.tile(bias_tt, (1, H)))                        # (T, H*T)

    return jnp.asarray(slab)


@jax.jit
def external_model_forward(values, slab):
    """values: (B, S, D) float32 -> embeds: (B, S, P) float32"""
    x2d = values.reshape(T, D)
    out2d = pl.pallas_call(
        encoder_proj_kernel,
        out_shape=jax.ShapeDtypeStruct((T, P), jnp.float32),
        cost_estimate=pl.CostEstimate(
            flops=_FLOPS, transcendentals=_TRANS, bytes_accessed=_BYTES),
    )(x2d, slab)
    return out2d.reshape(B, S, P)


# ------------------------------ reference (plain JAX) -------------------------
def reference_forward(values, params):
    (ln1w, ln1b, wq, bq, wk, bk, wv, bv, wo, bo,
     ln2w, ln2b, w1, b1, w2, b2, lnfw, lnfb, wp) = params

    def ln(x, w, b):
        mu = jnp.mean(x, -1, keepdims=True)
        var = jnp.mean((x - mu) ** 2, -1, keepdims=True)
        return (x - mu) / jnp.sqrt(var + LN_EPS) * w[0] + b[0]

    x = values
    h = ln(x, ln1w, ln1b)
    q = h @ wq + bq[0]
    k = h @ wk + bk[0]
    v = h @ wv + bv[0]
    q = q.reshape(B, S, H, DH).transpose(0, 2, 1, 3)
    k = k.reshape(B, S, H, DH).transpose(0, 2, 1, 3)
    v = v.reshape(B, S, H, DH).transpose(0, 2, 1, 3)
    s = jnp.einsum("bhqd,bhkd->bhqk", q, k) / (DH ** 0.5)
    p = jax.nn.softmax(s, axis=-1)
    a = jnp.einsum("bhqk,bhkd->bhqd", p, v).transpose(0, 2, 1, 3).reshape(B, S, D)
    x = x + a @ wo + bo[0]
    h = ln(x, ln2w, ln2b)
    h = jax.nn.gelu(h @ w1 + b1[0], approximate=True)
    x = x + h @ w2 + b2[0]
    x = ln(x, lnfw, lnfb)
    return x @ wp


# ------------------------------ param init ------------------------------------
def init_params(key):
    ks = jax.random.split(key, 8)
    normal = lambda k, shape, std: (std * jax.random.normal(k, shape)).astype(jnp.float32)
    wq = normal(ks[0], (D, D), 0.02)
    wk = normal(ks[1], (D, D), 0.02)
    wv = normal(ks[2], (D, D), 0.02)
    wo = normal(ks[3], (D, D), 0.02)
    w1 = normal(ks[4], (D, M), 0.02)
    w2 = normal(ks[5], (M, D), 0.02)
    # projection: nn.Linear(embed_dim, projection_dim, bias=False), std = embed_dim**-0.5
    wp = normal(ks[6], (D, P), D ** (-0.5))
    zeros = lambda n: jnp.zeros((1, n), jnp.float32)
    ones = lambda n: jnp.ones((1, n), jnp.float32)
    # LayerNorm: weight=1, bias=0 ; Linear biases zero (per _init_weights)
    params = (
        ones(D), zeros(D),                  # ln1
        wq, zeros(D), wk, zeros(D), wv, zeros(D),
        wo, zeros(D),
        ones(D), zeros(D),                  # ln2
        w1, zeros(M), w2, zeros(D),
        ones(D), zeros(D),                  # final ln
        wp,
    )
    return params


# ------------------------------ main -------------------------------------------
if __name__ == "__main__":
    key = jax.random.PRNGKey(0)
    k_x, k_p = jax.random.split(key)
    values = jax.random.normal(k_x, (B, S, D), dtype=jnp.float32)
    params = init_params(k_p)
    slab = pack_params(params)     # one-time repack, outside the forward path

    out = external_model_forward(values, slab)
    out = jax.block_until_ready(out)
    assert out.shape == (B, S, P), out.shape

    ref = reference_forward(values, params)
    err = float(jnp.max(jnp.abs(out - ref)))
    assert jnp.allclose(out, ref, atol=1e-3, rtol=1e-3), err

    print("KERNEL_OK")
</pallas_src>

<mosaic_0001>
module attributes {stable_mosaic.version = 11 : i64} {
  func.func @encoder_proj_kernel(%arg0: memref<16x32xf32, #tpu.memory_space<vmem>>, %arg1: memref<264x128xf32, #tpu.memory_space<vmem>>, %arg2: memref<16x16xf32, #tpu.memory_space<vmem>>) attributes {dimension_semantics = [], scalar_prefetch = 0 : i64, scratch_operands = 0 : i64, tpu.core_type = #tpu.core_type<tc>} {
    %c0 = arith.constant 0 : index
    %c0_0 = arith.constant 0 : index
    %0 = vector.load %arg0[%c0, %c0_0] : memref<16x32xf32, #tpu.memory_space<vmem>>, vector<16x32xf32>
    %c176 = arith.constant 176 : index
    %c0_1 = arith.constant 0 : index
    %1 = vector.load %arg1[%c176, %c0_1] : memref<264x128xf32, #tpu.memory_space<vmem>>, vector<1x32xf32>
    %c177 = arith.constant 177 : index
    %c0_2 = arith.constant 0 : index
    %2 = vector.load %arg1[%c177, %c0_2] : memref<264x128xf32, #tpu.memory_space<vmem>>, vector<1x32xf32>
    %cst = arith.constant dense<0.000000e+00> : vector<16xf32>
    %3 = vector.multi_reduction <add>, %0, %cst [1] : vector<16x32xf32> to vector<16xf32>
    %4 = vector.shape_cast %3 : vector<16xf32> to vector<16x1xf32>
    %cst_3 = arith.constant 3.200000e+01 : f32
    %5 = vector.broadcast %cst_3 : f32 to vector<16x1xf32>
    %6 = arith.divf %4, %5 : vector<16x1xf32>
    %7 = vector.broadcast %6 : vector<16x1xf32> to vector<16x32xf32>
    %8 = arith.subf %0, %7 : vector<16x32xf32>
    %9 = arith.mulf %8, %8 : vector<16x32xf32>
    %cst_4 = arith.constant dense<0.000000e+00> : vector<16xf32>
    %10 = vector.multi_reduction <add>, %9, %cst_4 [1] : vector<16x32xf32> to vector<16xf32>
    %11 = vector.shape_cast %10 : vector<16xf32> to vector<16x1xf32>
    %cst_5 = arith.constant 3.200000e+01 : f32
    %12 = vector.broadcast %cst_5 : f32 to vector<16x1xf32>
    %13 = arith.divf %11, %12 : vector<16x1xf32>
    %14 = vector.broadcast %6 : vector<16x1xf32> to vector<16x32xf32>
    %15 = arith.subf %0, %14 : vector<16x32xf32>
    %cst_6 = arith.constant 9.99999974E-6 : f32
    %16 = vector.broadcast %cst_6 : f32 to vector<16x1xf32>
    %17 = arith.addf %13, %16 : vector<16x1xf32>
    %18 = math.rsqrt %17 : vector<16x1xf32>
    %19 = vector.broadcast %18 : vector<16x1xf32> to vector<16x32xf32>
    %20 = arith.mulf %15, %19 : vector<16x32xf32>
    %21 = vector.broadcast %1 : vector<1x32xf32> to vector<16x32xf32>
    %22 = arith.mulf %20, %21 : vector<16x32xf32>
    %23 = vector.broadcast %2 : vector<1x32xf32> to vector<16x32xf32>
    %24 = arith.addf %22, %23 : vector<16x32xf32>
    %c0_7 = arith.constant 0 : index
    %c0_8 = arith.constant 0 : index
    %25 = vector.load %arg1[%c0_7, %c0_8] : memref<264x128xf32, #tpu.memory_space<vmem>>, vector<32x96xf32>
    %c160 = arith.constant 160 : index
    %c0_9 = arith.constant 0 : index
    %26 = vector.load %arg1[%c160, %c0_9] : memref<264x128xf32, #tpu.memory_space<vmem>>, vector<1x96xf32>
    %cst_10 = arith.constant dense<0.000000e+00> : vector<16x96xf32>
    %27 = tpu.matmul %24, %25, %cst_10 {dimension_numbers = #tpu.dot_dimension_numbers<[1], [0], [0], [1], [0, 0, 1, 1], [], []>} : vector<16x32xf32>, vector<32x96xf32>, vector<16x96xf32> -> vector<16x96xf32>
    %28 = vector.broadcast %26 : vector<1x96xf32> to vector<16x96xf32>
    %29 = arith.addf %27, %28 : vector<16x96xf32>
    %30 = vector.extract_strided_slice %29 {offsets = [0, 0], sizes = [16, 32], strides = [1, 1]} : vector<16x96xf32> to vector<16x32xf32>
    %31 = vector.extract_strided_slice %29 {offsets = [0, 32], sizes = [16, 32], strides = [1, 1]} : vector<16x96xf32> to vector<16x32xf32>
    %32 = vector.extract_strided_slice %29 {offsets = [0, 64], sizes = [16, 32], strides = [1, 1]} : vector<16x96xf32> to vector<16x32xf32>
    %c184 = arith.constant 184 : index
    %c0_11 = arith.constant 0 : index
    %33 = vector.load %arg1[%c184, %c0_11] : memref<264x128xf32, #tpu.memory_space<vmem>>, vector<64x32xf32>
    %c248 = arith.constant 248 : index
    %c0_12 = arith.constant 0 : index
    %34 = vector.load %arg1[%c248, %c0_12] : memref<264x128xf32, #tpu.memory_space<vmem>>, vector<16x64xf32>
    %35 = tpu.concatenate %31, %31, %31, %31 in 0 : vector<16x32xf32>, vector<16x32xf32>, vector<16x32xf32>, vector<16x32xf32> -> vector<64x32xf32>
    %36 = arith.mulf %35, %33 : vector<64x32xf32>
    %37 = tpu.concatenate %32, %32, %32, %32 in 0 : vector<16x32xf32>, vector<16x32xf32>, vector<16x32xf32>, vector<16x32xf32> -> vector<64x32xf32>
    %38 = arith.mulf %37, %33 : vector<64x32xf32>
    %cst_13 = arith.constant dense<0.000000e+00> : vector<16x64xf32>
    %39 = tpu.matmul %30, %36, %cst_13 {dimension_numbers = #tpu.dot_dimension_numbers<[1], [1], [0], [0], [0, 0, 1, 0], [], []>} : vector<16x32xf32>, vector<64x32xf32>, vector<16x64xf32> -> vector<16x64xf32>
    %40 = arith.addf %39, %34 : vector<16x64xf32>
    %cst_14 = arith.constant dense<0xFF800000> : vector<16xf32>
    %41 = vector.multi_reduction <maximumf>, %40, %cst_14 [1] : vector<16x64xf32> to vector<16xf32>
    %42 = vector.shape_cast %41 : vector<16xf32> to vector<16x1xf32>
    %43 = vector.broadcast %42 : vector<16x1xf32> to vector<16x64xf32>
    %44 = arith.subf %40, %43 : vector<16x64xf32>
    %45 = math.exp %44 : vector<16x64xf32>
    %cst_15 = arith.constant dense<0.000000e+00> : vector<16x32xf32>
    %46 = tpu.matmul %45, %38, %cst_15 {dimension_numbers = #tpu.dot_dimension_numbers<[1], [0], [0], [1], [0, 0, 1, 1], [], []>} : vector<16x64xf32>, vector<64x32xf32>, vector<16x32xf32> -> vector<16x32xf32>
    %cst_16 = arith.constant dense<0.000000e+00> : vector<16x32xf32>
    %47 = tpu.matmul %45, %33, %cst_16 {dimension_numbers = #tpu.dot_dimension_numbers<[1], [0], [0], [1], [0, 0, 1, 1], [], []>} : vector<16x64xf32>, vector<64x32xf32>, vector<16x32xf32> -> vector<16x32xf32>
    %48 = tpu.reciprocal %47 {approx = true} : vector<16x32xf32> -> vector<16x32xf32>
    %49 = arith.mulf %46, %48 : vector<16x32xf32>
    %c32 = arith.constant 32 : index
    %c0_17 = arith.constant 0 : index
    %50 = vector.load %arg1[%c32, %c0_17] : memref<264x128xf32, #tpu.memory_space<vmem>>, vector<32x32xf32>
    %c182 = arith.constant 182 : index
    %c0_18 = arith.constant 0 : index
    %51 = vector.load %arg1[%c182, %c0_18] : memref<264x128xf32, #tpu.memory_space<vmem>>, vector<1x32xf32>
    %cst_19 = arith.constant dense<0.000000e+00> : vector<16x32xf32>
    %52 = tpu.matmul %49, %50, %cst_19 {dimension_numbers = #tpu.dot_dimension_numbers<[1], [0], [0], [1], [0, 0, 1, 1], [], []>} : vector<16x32xf32>, vector<32x32xf32>, vector<16x32xf32> -> vector<16x32xf32>
    %53 = arith.addf %0, %52 : vector<16x32xf32>
    %54 = vector.broadcast %51 : vector<1x32xf32> to vector<16x32xf32>
    %55 = arith.addf %53, %54 : vector<16x32xf32>
    %c178 = arith.constant 178 : index
    %c0_20 = arith.constant 0 : index
    %56 = vector.load %arg1[%c178, %c0_20] : memref<264x128xf32, #tpu.memory_space<vmem>>, vector<1x32xf32>
    %c179 = arith.constant 179 : index
    %c0_21 = arith.constant 0 : index
    %57 = vector.load %arg1[%c179, %c0_21] : memref<264x128xf32, #tpu.memory_space<vmem>>, vector<1x32xf32>
    %cst_22 = arith.constant dense<0.000000e+00> : vector<16xf32>
    %58 = vector.multi_reduction <add>, %55, %cst_22 [1] : vector<16x32xf32> to vector<16xf32>
    %59 = vector.shape_cast %58 : vector<16xf32> to vector<16x1xf32>
    %cst_23 = arith.constant 3.200000e+01 : f32
    %60 = vector.broadcast %cst_23 : f32 to vector<16x1xf32>
    %61 = arith.divf %59, %60 : vector<16x1xf32>
    %62 = vector.broadcast %61 : vector<16x1xf32> to vector<16x32xf32>
    %63 = arith.subf %55, %62 : vector<16x32xf32>
    %64 = arith.mulf %63, %63 : vector<16x32xf32>
    %cst_24 = arith.constant dense<0.000000e+00> : vector<16xf32>
    %65 = vector.multi_reduction <add>, %64, %cst_24 [1] : vector<16x32xf32> to vector<16xf32>
    %66 = vector.shape_cast %65 : vector<16xf32> to vector<16x1xf32>
    %cst_25 = arith.constant 3.200000e+01 : f32
    %67 = vector.broadcast %cst_25 : f32 to vector<16x1xf32>
    %68 = arith.divf %66, %67 : vector<16x1xf32>
    %69 = vector.broadcast %61 : vector<16x1xf32> to vector<16x32xf32>
    %70 = arith.subf %55, %69 : vector<16x32xf32>
    %cst_26 = arith.constant 9.99999974E-6 : f32
    %71 = vector.broadcast %cst_26 : f32 to vector<16x1xf32>
    %72 = arith.addf %68, %71 : vector<16x1xf32>
    %73 = math.rsqrt %72 : vector<16x1xf32>
    %74 = vector.broadcast %73 : vector<16x1xf32> to vector<16x32xf32>
    %75 = arith.mulf %70, %74 : vector<16x32xf32>
    %76 = vector.broadcast %56 : vector<1x32xf32> to vector<16x32xf32>
    %77 = arith.mulf %75, %76 : vector<16x32xf32>
    %78 = vector.broadcast %57 : vector<1x32xf32> to vector<16x32xf32>
    %79 = arith.addf %77, %78 : vector<16x32xf32>
    %c64 = arith.constant 64 : index
    %c0_27 = arith.constant 0 : index
    %80 = vector.load %arg1[%c64, %c0_27] : memref<264x128xf32, #tpu.memory_space<vmem>>, vector<32x128xf32>
    %c168 = arith.constant 168 : index
    %c0_28 = arith.constant 0 : index
    %81 = vector.load %arg1[%c168, %c0_28] : memref<264x128xf32, #tpu.memory_space<vmem>>, vector<1x128xf32>
    %cst_29 = arith.constant dense<0.000000e+00> : vector<16x128xf32>
    %82 = tpu.matmul %79, %80, %cst_29 {dimension_numbers = #tpu.dot_dimension_numbers<[1], [0], [0], [1], [0, 0, 1, 1], [], []>} : vector<16x32xf32>, vector<32x128xf32>, vector<16x128xf32> -> vector<16x128xf32>
    %83 = vector.broadcast %81 : vector<1x128xf32> to vector<16x128xf32>
    %84 = arith.addf %82, %83 : vector<16x128xf32>
    %85 = arith.mulf %84, %84 : vector<16x128xf32>
    %86 = arith.mulf %84, %85 : vector<16x128xf32>
    %cst_30 = arith.constant 4.471500e-02 : f32
    %87 = vector.broadcast %cst_30 : f32 to vector<16x128xf32>
    %88 = arith.mulf %87, %86 : vector<16x128xf32>
    %89 = arith.addf %84, %88 : vector<16x128xf32>
    %cst_31 = arith.constant 0.797884583 : f32
    %90 = vector.broadcast %cst_31 : f32 to vector<16x128xf32>
    %91 = arith.mulf %90, %89 : vector<16x128xf32>
    %92 = math.tanh %91 : vector<16x128xf32>
    %cst_32 = arith.constant 1.000000e+00 : f32
    %93 = vector.broadcast %cst_32 : f32 to vector<16x128xf32>
    %94 = arith.addf %93, %92 : vector<16x128xf32>
    %cst_33 = arith.constant 5.000000e-01 : f32
    %95 = vector.broadcast %cst_33 : f32 to vector<16x128xf32>
    %96 = arith.mulf %95, %94 : vector<16x128xf32>
    %97 = arith.mulf %84, %96 : vector<16x128xf32>
    %c96 = arith.constant 96 : index
    %c0_34 = arith.constant 0 : index
    %98 = vector.load %arg1[%c96, %c0_34] : memref<264x128xf32, #tpu.memory_space<vmem>>, vector<32x128xf32>
    %c183 = arith.constant 183 : index
    %c0_35 = arith.constant 0 : index
    %99 = vector.load %arg1[%c183, %c0_35] : memref<264x128xf32, #tpu.memory_space<vmem>>, vector<1x32xf32>
    %cst_36 = arith.constant dense<0.000000e+00> : vector<16x32xf32>
    %100 = tpu.matmul %97, %98, %cst_36 {dimension_numbers = #tpu.dot_dimension_numbers<[1], [1], [0], [0], [0, 0, 1, 0], [], []>} : vector<16x128xf32>, vector<32x128xf32>, vector<16x32xf32> -> vector<16x32xf32>
    %101 = vector.broadcast %99 : vector<1x32xf32> to vector<16x32xf32>
    %102 = arith.addf %100, %101 : vector<16x32xf32>
    %103 = arith.addf %55, %102 : vector<16x32xf32>
    %c180 = arith.constant 180 : index
    %c0_37 = arith.constant 0 : index
    %104 = vector.load %arg1[%c180, %c0_37] : memref<264x128xf32, #tpu.memory_space<vmem>>, vector<1x32xf32>
    %c181 = arith.constant 181 : index
    %c0_38 = arith.constant 0 : index
    %105 = vector.load %arg1[%c181, %c0_38] : memref<264x128xf32, #tpu.memory_space<vmem>>, vector<1x32xf32>
    %cst_39 = arith.constant dense<0.000000e+00> : vector<16xf32>
    %106 = vector.multi_reduction <add>, %103, %cst_39 [1] : vector<16x32xf32> to vector<16xf32>
    %107 = vector.shape_cast %106 : vector<16xf32> to vector<16x1xf32>
    %cst_40 = arith.constant 3.200000e+01 : f32
    %108 = vector.broadcast %cst_40 : f32 to vector<16x1xf32>
    %109 = arith.divf %107, %108 : vector<16x1xf32>
    %110 = vector.broadcast %109 : vector<16x1xf32> to vector<16x32xf32>
    %111 = arith.subf %103, %110 : vector<16x32xf32>
    %112 = arith.mulf %111, %111 : vector<16x32xf32>
    %cst_41 = arith.constant dense<0.000000e+00> : vector<16xf32>
    %113 = vector.multi_reduction <add>, %112, %cst_41 [1] : vector<16x32xf32> to vector<16xf32>
    %114 = vector.shape_cast %113 : vector<16xf32> to vector<16x1xf32>
    %cst_42 = arith.constant 3.200000e+01 : f32
    %115 = vector.broadcast %cst_42 : f32 to vector<16x1xf32>
    %116 = arith.divf %114, %115 : vector<16x1xf32>
    %117 = vector.broadcast %109 : vector<16x1xf32> to vector<16x32xf32>
    %118 = arith.subf %103, %117 : vector<16x32xf32>
    %cst_43 = arith.constant 9.99999974E-6 : f32
    %119 = vector.broadcast %cst_43 : f32 to vector<16x1xf32>
    %120 = arith.addf %116, %119 : vector<16x1xf32>
    %121 = math.rsqrt %120 : vector<16x1xf32>
    %122 = vector.broadcast %121 : vector<16x1xf32> to vector<16x32xf32>
    %123 = arith.mulf %118, %122 : vector<16x32xf32>
    %124 = vector.broadcast %104 : vector<1x32xf32> to vector<16x32xf32>
    %125 = arith.mulf %123, %124 : vector<16x32xf32>
    %126 = vector.broadcast %105 : vector<1x32xf32> to vector<16x32xf32>
    %127 = arith.addf %125, %126 : vector<16x32xf32>
    %c128 = arith.constant 128 : index
    %c0_44 = arith.constant 0 : index
    %128 = vector.load %arg1[%c128, %c0_44] : memref<264x128xf32, #tpu.memory_space<vmem>>, vector<32x16xf32>
    %cst_45 = arith.constant dense<0.000000e+00> : vector<16x16xf32>
    %129 = tpu.matmul %127, %128, %cst_45 {dimension_numbers = #tpu.dot_dimension_numbers<[1], [0], [0], [1], [0, 0, 1, 1], [], []>} : vector<16x32xf32>, vector<32x16xf32>, vector<16x16xf32> -> vector<16x16xf32>
    %c0_46 = arith.constant 0 : index
    %c0_47 = arith.constant 0 : index
    %130 = vector.load %arg2[%c0_46, %c0_47] : memref<16x16xf32, #tpu.memory_space<vmem>>, vector<16x16xf32>
    tpu.vector_store %arg2[%c0_46, %c0_47], %129 {strides = array<i32>} : memref<16x16xf32, #tpu.memory_space<vmem>>, vector<16x16xf32>,
    return
  }
}

</mosaic_0001>

<bundles_post_ra>
// kernel: external_model_forward.1
= control target key start
LH: loop header
LB: loop body
LE: loop exit
PB: predicated region body
PF: predicated region fallthrough
CT: control target
= control target key end

     0   :  { %7 = vsyncpa [#allocation3], 0  ;;  %s1045_s0 = inlined_call_operand.hbm [shape: f32[16,32], index: 0, kind: input, shape index: {}]   ;;  %s1046_s1 = inlined_call_operand.hbm [shape: f32[264,128], index: 1, kind: input, shape index: {}]   ;;  %s1047_s2 = inlined_call_operand.hbm [shape: f32[16,16], index: 2, kind: output, shape index: {}]  }
   0x1   :  { %8 = vsyncpa [#allocation6], 0 }
   0x2   :  { %9 = vsyncpa [#allocation4], 0  ;;  %s14_s11 = sshll.u32 %s1045_s0, 4  ;;  %s841_s12 = smov [#allocation2]   ;;  %s15_s11 = int_to_ptr.hbm [resolvable:$true] %s14_s11 }
   0x3   :  { %s16_s13 = sshll.u32 %s841_s12, 4  ;;  %s27_s16 = sshll.u32 %s1046_s1, 4  ;;  %s17_s13 = int_to_ptr.vmem [resolvable:$true] %s16_s13  ;;  %s28_s16 = int_to_ptr.hbm [resolvable:$true] %s27_s16 }
   0x4   :  { %s842_s17 = smov 128   ;;  %s843_s18 = smov 8  }
   0x5   :  { %22 = dma.hbm_to_vmem [thread:$0]  %s15_s11, 256, %s17_s13, [#allocation3], %s842_s17, %s842_s17, %s843_s18  }
   0x6   :  { %s844_s19 = smov [#allocation5]  }
   0x7   :  { %s29_s20 = sshll.u32 %s844_s19, 4  ;;  %s30_s20 = int_to_ptr.vmem [resolvable:$true] %s29_s20 }
   0x8   :  { %35 = dma.hbm_to_vmem [thread:$0]  %s28_s16, 4224, %s30_s20, [#allocation6], %s842_s17, %s842_s17, %s843_s18  }
   0x9   :  { %835 = dma.done.wait [#allocation3], 256  }
   0xa   :  { %836 = vsyncadd [#allocation3], 4294967040 }
   0xb   :  { %837 = dma.done.wait [#allocation6], 4224  }
   0xc   :  { %838 = vsyncadd [#allocation6], 4294963072  ;;  %vm48_vm0 = vcmask 261120   ;;  %v877_v0 = vld [vmem:[#allocation2] sm:$0xff]  ;;  %v881_v2 = vld [vmem:[#allocation2 + $0x8] sm:$0xff]  ;;  %v845_v4 = vmov 32.0  }
   0xd   :  { %v49_v1 = vsel %vm48_vm0, %v877_v0, 0.0  ;;  %v52_v3 = vsel %vm48_vm0, %v881_v2, 0.0  ;;  %737 = vrcp.f32 %v845_v4  ;;  %v109_v21 = vld [vmem:[#allocation5 + $0x18] sm:$0xff]  ;;  %v108_v22 = vld [vmem:[#allocation5 + $0x10] sm:$0xff]  ;;  %v107_v23 = vld [vmem:[#allocation5 + $0x8] sm:$0xff]  ;;  %s846_s0 = smov 32  }
   0xe   :  { %50 = vadd.xlane.f32.xlu0 %v49_v1  ;;  %130 = vmatpush.msra.mxu0 %v109_v21  ;;  %v106_v24 = vld [vmem:[#allocation5] sm:$0xff]  ;;  %v906_v29 = vld [vmem:[#allocation5 + $0xf0] sm:$0xff]  ;;  %v908_v30 = vld [vmem:[#allocation5 + $0xb8] sm:$0xff]  ;;  %s847_s1 = smov 96   ;;  %s848_s21 = smov 64   ;;  %vm292_vm8 = vcmask 523264  }
   0xf   :  { %v901_v25 = vld [vmem:[#allocation5 + $0xe0] sm:$0xff]  ;;  %v910_v31 = vld [vmem:[#allocation5 + $0xd8] sm:$0xff]  ;;  %173 = vrot.lane.b32.xlu2 %v906_v29, %s846_s0  ;;  %374 = vmatpush.msra.mxu3 %v906_v29  ;;  %v919_v33 = vld [vmem:[#allocation5 + $0xe8] sm:$0xff]  ;;  %s849_s22 = smov [#allocation7]   ;;  %s662_s26 = sshll.u32 %s1047_s2, 4  ;;  %s663_s26 = int_to_ptr.hbm [resolvable:$true] %s662_s26 }
  0x10   :  { %131 = vmatpush.msra.mxu0 %v108_v22  ;;  %v927_v39 = vld [vmem:[#allocation5 + $0xd0] sm:$0xff]  ;;  %v930_v41 = vld [vmem:[#allocation5 + $0xc8] sm:$0xff]  ;;  %v933_v43 = vld [vmem:[#allocation5 + $0xc0] sm:$0xff]  ;;  %s660_s23 = sshll.u32 %s849_s22, 4  ;;  %s661_s23 = int_to_ptr.vmem [resolvable:$true] %s660_s23 }
  0x11   :  { %375 = vmatpush.msra.mxu3 %v919_v33  ;;  %v727_v47 = vld [vmem:[#allocation5 + $0xb0] ss:$0 sm:$0xff]  ;;  %v728_v51 = vld [vmem:[#allocation5 + $0xb1] ss:$0 sm:$0xff]  ;;  %v729_v63 = vld [vmem:[#allocation5 + $0xa0] ss:$0 sm:$0xff] }
  0x12   :  { %132 = vmatpush.msra.mxu0 %v107_v23 }
  0x13   :  { %v738_v5 = vpop.eup %737  ;;  %376 = vmatpush.msra.mxu3 %v901_v25 }
  0x14   :  { %v56_v6 = vmul.f32 32.0, %v738_v5  ;;  %vm60_vm1 = vweird.f32 %v738_v5  ;;  %133 = vmatpush.msra.mxu0 %v106_v24 }
  0x15   :  { %377 = vmatpush.msra.mxu3 %v910_v31 }
  0x16   :  { %53 = vadd.xlane.f32.xlu0 %v52_v3  ;;  %v57_v7 = vsub.f32 1.0, %v56_v6 }
  0x17   :  { %171 = vrot.lane.b32.xlu2 %v919_v33, %s846_s0  ;;  %378 = vmatpush.msra.mxu3 %v927_v39 }
  0x18   :  { %v58_v8 = vmul.f32 %v738_v5, %v57_v7 }
  0x19   :  { %379 = vmatpush.msra.mxu3 %v930_v41 }
  0x1a   :  { %v59_v9 = vadd.f32 %v738_v5, %v58_v8 }
  0x1b   :  { %380 = vmatpush.msra.mxu3 %v933_v43 }
  0x1c   :  { %v885_v10 = vsel %vm60_vm1, %v738_v5, %v59_v9 }
  0x1d   :  { %381 = vmatpush.msra.mxu3 %v908_v30 }
  0x1f   :  { %165 = vrot.lane.b32.xlu2 %v927_v39, %s846_s0 }
  0x27   :  { %163 = vrot.lane.b32.xlu2 %v930_v41, %s846_s0 }
  0x2a   :  { %169 = vrot.lane.b32.xlu0 %v901_v25, %s846_s0 }
  0x2f   :  { %161 = vrot.lane.b32.xlu2 %v933_v43, %s846_s0 }
  0x32   :  { %159 = vrot.lane.b32.xlu0 %v908_v30, %s846_s0 }
  0x69   :  { %v174_v61 = vpop.permute.xlu2 %173 }
  0x71   :  { %v172_v62 = vpop.permute.xlu2 %171 }
  0x79   :  { %v166_v5 = vpop.permute.xlu2 %165 }
  0x81   :  { %v51_v11 = vpop.xlane.xlu0 %50 }
  0x82   :  { %v62_v12 = vmul.f32 %v885_v10, %v51_v11 }
  0x84   :  { %v889_v13 = vsub.f32 %v877_v0, %v62_v12 }
  0x86   :  { %v66_v14 = vmul.f32 %v889_v13, %v889_v13 }
  0x88   :  { %v68_v15 = vsel %vm48_vm0, %v66_v14, 0.0 }
  0x89   :  { %69 = vadd.xlane.f32.xlu1 %v68_v15  ;;  %v54_v16 = vpop.xlane.xlu0 %53 }
  0x8a   :  { %v63_v17 = vmul.f32 %v885_v10, %v54_v16 }
  0x8c   :  { %v896_v18 = vsub.f32 %v881_v2, %v63_v17 }
  0x8e   :  { %v67_v19 = vmul.f32 %v896_v18, %v896_v18 }
  0x90   :  { %v71_v20 = vsel %vm48_vm0, %v67_v19, 0.0 }
  0x91   :  { %72 = vadd.xlane.f32.xlu1 %v71_v20 }
  0x9c   :  { %v170_v6 = vpop.permute.xlu0 %169 }
  0xa4   :  { %v160_v15 = vpop.permute.xlu0 %159 }
  0xaa   :  { %167 = vrot.lane.b32.xlu1 %v910_v31, %s846_s0 }
  0xfc   :  { %v70_v26 = vpop.xlane.xlu1 %69 }
  0xfd   :  { %v74_v27 = vmul.f32 %v70_v26, %v885_v10 }
  0xff   :  { %v76_v28 = vadd.f32 1e-05, %v74_v27 }
 0x101   :  { %739 = vrsqrt.f32 %v76_v28  ;;  %vm84_vm3 = vweird.f32 %v76_v28 }
 0x104   :  { %v73_v32 = vpop.xlane.xlu1 %72 }
 0x105   :  { %v75_v34 = vmul.f32 %v73_v32, %v885_v10 }
 0x107   :  { %v740_v35 = vpop.eup %739  ;;  %v77_v36 = vadd.f32 1e-05, %v75_v34 }
 0x108   :  { %v79_v37 = vmul.f32 %v740_v35, %v76_v28  ;;  %vm85_vm2 = vweird.f32 %v740_v35 }
 0x109   :  { %741 = vrsqrt.f32 %v77_v36  ;;  %vm86_vm4 = vmor %vm84_vm3, %vm85_vm2  ;;  %vm94_vm6 = vweird.f32 %v77_v36 }
 0x10a   :  { %v80_v38 = vmul.f32 %v740_v35, %v79_v37 }
 0x10c   :  { %v81_v40 = vmul.f32 0.5, %v80_v38 }
 0x10e   :  { %v82_v42 = vsub.f32 1.5, %v81_v40 }
 0x10f   :  { %v742_v44 = vpop.eup %741 }
 0x110   :  { %v83_v45 = vmul.f32 %v740_v35, %v82_v42  ;;  %v89_v46 = vmul.f32 %v742_v44, %v77_v36  ;;  %vm95_vm5 = vweird.f32 %v742_v44 }
 0x111   :  { %vm96_vm7 = vmor %vm94_vm6, %vm95_vm5  ;;  %vm653_vm6 = vcmask 130048  }
 0x112   :  { %v87_v48 = vsel %vm86_vm4, %v740_v35, %v83_v45  ;;  %v90_v49 = vmul.f32 %v742_v44, %v89_v46 }
 0x113   :  { %v98_v50 = vmul.f32 %v87_v48, %v889_v13  ;;  %v164_v13 = vpop.permute.xlu2 %163 }
 0x114   :  { %v91_v52 = vmul.f32 0.5, %v90_v49 }
 0x115   :  { %v101_v53 = vmul.f32 %v727_v47, %v98_v50 }
 0x116   :  { %v92_v54 = vsub.f32 1.5, %v91_v52 }
 0x117   :  { %v104_v55 = vadd.f32 %v728_v51, %v101_v53 }
 0x118   :  { %v93_v56 = vmul.f32 %v742_v44, %v92_v54 }
 0x119   :  { %676 = vmatmul.msk.f32.vlgmr.msra.gmra.mxu0 %vm48_vm0, %v104_v55  ;;  %v149_v55 = vld [vmem:[#allocation5 + $0xf8] sm:$0xff] }
 0x11a   :  { %v97_v57 = vsel %vm96_vm7, %v742_v44, %v93_v56 }
 0x11b   :  { %v99_v58 = vmul.f32 %v97_v57, %v896_v18  ;;  %v162_v19 = vpop.permute.xlu2 %161 }
 0x11c   :  { %v168_v14 = vpop.permute.xlu1 %167 }
 0x11d   :  { %v102_v59 = vmul.f32 %v727_v47, %v99_v58 }
 0x11f   :  { %v105_v60 = vadd.f32 %v728_v51, %v102_v59 }
 0x121   :  { %677 = vmatmul.msk.f32.gmra.mxu0 %vm48_vm0, %v105_v60 }
 0x196   :  { %v135_v1 = vpop.f32.mrf.mxu0 }
 0x197   :  { %v947_v3 = vadd.f32 %v729_v63, %v135_v1 }
 0x199   :  { %v189_v4 = vmul.f32 %v172_v62, %v947_v3  ;;  %v187_v16 = vmul.f32 %v168_v14, %v947_v3  ;;  %v183_v17 = vmul.f32 %v160_v15, %v947_v3  ;;  %v185_v18 = vmul.f32 %v164_v13, %v947_v3  ;;  %v150_v62 = vld [vmem:[#allocation5 + $0x100] sm:$0xff] }
 0x19b   :  { %243 = vrot.lane.b32.xlu1 %v189_v4, %s847_s1 }
 0x19e   :  { %v138_v7 = vpop.f32.mrf.mxu0 }
 0x19f   :  { %v950_v8 = vadd.f32 %v729_v63, %v138_v7  ;;  %v396_v7 = vld [vmem:[#allocation5 + $0x38] sm:$0xff] }
 0x1a0   :  { %416 = vmatpush.msrb.mxu0 %v396_v7 }
 0x1a1   :  { %v190_v9 = vmul.f32 %v174_v61, %v950_v8  ;;  %v186_v11 = vmul.f32 %v166_v5, %v950_v8  ;;  %v188_v12 = vmul.f32 %v170_v6, %v950_v8  ;;  %v184_v20 = vmul.f32 %v162_v19, %v950_v8  ;;  %v393_v19 = vld [vmem:[#allocation5 + $0x20] sm:$0xff] }
 0x1a3   :  { %245 = vrot.lane.b32.xlu2 %v190_v9, %s847_s1  ;;  %237 = vrot.lane.b32.xlu1 %v186_v11, %s847_s1 }
 0x1a4   :  { %241 = vrot.lane.b32.xlu0 %v188_v12, %s847_s1 }
 0x1ab   :  { %239 = vrot.lane.b32.xlu2 %v187_v16, %s847_s1  ;;  %231 = vrot.lane.b32.xlu1 %v183_v17, %s847_s1 }
 0x1ac   :  { %235 = vrot.lane.b32.xlu0 %v185_v18, %s847_s1  ;;  %v394_v18 = vld [vmem:[#allocation5 + $0x28] sm:$0xff] }
 0x1b3   :  { %233 = vrot.lane.b32.xlu2 %v184_v20, %s847_s1  ;;  %201 = vrot.lane.b32.xlu1 %v901_v25, %s848_s21 }
 0x1b4   :  { %205 = vrot.lane.b32.xlu0 %v906_v29, %s848_s21 }
 0x1bb   :  { %203 = vrot.lane.b32.xlu2 %v919_v33, %s848_s21  ;;  %195 = vrot.lane.b32.xlu1 %v930_v41, %s848_s21 }
 0x1bc   :  { %199 = vrot.lane.b32.xlu0 %v910_v31, %s848_s21 }
 0x1c3   :  { %197 = vrot.lane.b32.xlu2 %v927_v39, %s848_s21 }
 0x1c4   :  { %193 = vrot.lane.b32.xlu0 %v933_v43, %s848_s21 }
 0x1cb   :  { %191 = vrot.lane.b32.xlu2 %v908_v30, %s848_s21 }
 0x1fd   :  { %v246_v21 = vpop.permute.xlu2 %245 }
 0x1fe   :  { %678 = vmatpush.xpose.msk.msra.mxu1 %vm48_vm0, %v246_v21 }
 0x205   :  { %v240_v23 = vpop.permute.xlu2 %239 }
 0x20d   :  { %v244_v22 = vpop.permute.xlu1 %243  ;;  %v234_v26 = vpop.permute.xlu2 %233 }
 0x20e   :  { %679 = vmatpush.xpose.msk.msra.mxu1 %vm48_vm0, %v244_v22 }
 0x215   :  { %v238_v24 = vpop.permute.xlu1 %237  ;;  %v204_v29 = vpop.permute.xlu2 %203 }
 0x216   :  { %v242_v25 = vpop.permute.xlu0 %241  ;;  %v221_v31 = vmul.f32 %v204_v29, %v947_v3 }
 0x217   :  { %680 = vmatpush.xpose.msk.msra.mxu1 %vm48_vm0, %v242_v25 }
 0x21b   :  { %681 = vmatpush.xpose.msk.msra.mxu1 %vm48_vm0, %v240_v23 }
 0x21d   :  { %v232_v27 = vpop.permute.xlu1 %231  ;;  %v198_v39 = vpop.permute.xlu2 %197 }
 0x21e   :  { %v236_v28 = vpop.permute.xlu0 %235  ;;  %v218_v42 = vmul.f32 %v198_v39, %v950_v8 }
 0x21f   :  { %682 = vmatpush.xpose.msk.msra.mxu1 %vm48_vm0, %v238_v24 }
 0x223   :  { %683 = vmatpush.xpose.msk.msra.mxu1 %vm48_vm0, %v236_v28  ;;  %v730_v28 = vld [vmem:[#allocation5 + $0xb6] ss:$0 sm:$0xff] }
 0x225   :  { %v202_v33 = vpop.permute.xlu1 %201  ;;  %v192_v45 = vpop.permute.xlu2 %191 }
 0x226   :  { %v206_v30 = vpop.permute.xlu0 %205  ;;  %v220_v36 = vmul.f32 %v202_v33, %v950_v8  ;;  %v215_v47 = vmul.f32 %v192_v45, %v947_v3  ;;  %v487_v45 = vld [vmem:[#allocation5 + $0x58] sm:$0xff] }
 0x227   :  { %v222_v32 = vmul.f32 %v206_v30, %v950_v8  ;;  %684 = vmatpush.xpose.msk.msra.mxu1 %vm48_vm0, %v234_v26 }
 0x229   :  { %v707_v34 = vpack.i.bf16 %v221_v31, %v222_v32 }
 0x22b   :  { %685 = vmatpush.xpose.msk.msra.mxu1 %vm48_vm0, %v232_v27  ;;  %708 = vrot.lane.b32.xlu0 %v707_v34, %s848_s21 }
 0x22d   :  { %v196_v40 = vpop.permute.xlu1 %195 }
 0x22e   :  { %686 = vmatmul.msk.f32.vlgmr.msra.gmra.mxu1 %vm48_vm0, %v947_v3  ;;  %v200_v35 = vpop.permute.xlu0 %199  ;;  %v217_v41 = vmul.f32 %v196_v40, %v947_v3 }
 0x22f   :  { %v219_v37 = vmul.f32 %v200_v35, %v947_v3 }
 0x230   :  { %v717_v43 = vpack.i.bf16 %v217_v41, %v218_v42 }
 0x231   :  { %v712_v38 = vpack.i.bf16 %v219_v37, %v220_v36 }
 0x233   :  { %713 = vrot.lane.b32.xlu0 %v712_v38, %s848_s21 }
 0x236   :  { %687 = vmatmul.msk.f32.gmra.mxu1 %vm48_vm0, %v950_v8  ;;  %v194_v44 = vpop.permute.xlu0 %193 }
 0x237   :  { %v216_v46 = vmul.f32 %v194_v44, %v950_v8  ;;  %v395_v8 = vld [vmem:[#allocation5 + $0x30] sm:$0xff] }
 0x238   :  { %417 = vmatpush.msrb.mxu0 %v395_v8 }
 0x239   :  { %v722_v48 = vpack.i.bf16 %v215_v47, %v216_v46  ;;  %v486_v46 = vld [vmem:[#allocation5 + $0x50] sm:$0xff]  ;;  %v485_v47 = vld [vmem:[#allocation5 + $0x48] sm:$0xff] }
 0x23a   :  { %418 = vmatpush.msrb.mxu0 %v394_v18  ;;  %v538_v18 = vld [vmem:[#allocation5 + $0x68] sm:$0xff] }
 0x23b   :  { %718 = vrot.lane.b32.xlu0 %v717_v43, %s848_s21 }
 0x23c   :  { %419 = vmatpush.msrb.mxu0 %v393_v19  ;;  %v537_v19 = vld [vmem:[#allocation5 + $0x60] sm:$0xff] }
 0x243   :  { %723 = vrot.lane.b32.xlu0 %v722_v48, %s848_s21  ;;  %v484_v48 = vld [vmem:[#allocation5 + $0x40] sm:$0xff] }
 0x29d   :  { %v709_v49 = vpop.permute.xlu0 %708 }
 0x29e   :  { %v710_v50 = vunpack.i.l.bf16 %v709_v49  ;;  %v711_v51 = vunpack.i.h.bf16 %v709_v49 }
 0x2a0   :  { %351 = vmatpush.msra.mxu2 %v710_v50 }
 0x2a2   :  { %352 = vmatpush.msra.mxu2 %v711_v51 }
 0x2a5   :  { %v714_v52 = vpop.permute.xlu0 %713 }
 0x2a6   :  { %v715_v53 = vunpack.i.l.bf16 %v714_v52  ;;  %v716_v54 = vunpack.i.h.bf16 %v714_v52 }
 0x2a8   :  { %353 = vmatpush.msra.mxu2 %v715_v53 }
 0x2aa   :  { %354 = vmatpush.msra.mxu2 %v716_v54 }
 0x2ab   :  { %v286_v56 = vpop.f32.mrf.mxu1 }
 0x2ac   :  { %v287_v57 = vadd.f32 %v286_v56, %v149_v55 }
 0x2ad   :  { %v719_v58 = vpop.permute.xlu0 %718 }
 0x2ae   :  { %v293_v59 = vsel %vm292_vm8, %v287_v57, -inf  ;;  %v720_v60 = vunpack.i.l.bf16 %v719_v58  ;;  %v721_v61 = vunpack.i.h.bf16 %v719_v58 }
 0x2af   :  { %294 = vmax.xlane.f32.xlu1 %v293_v59 }
 0x2b0   :  { %355 = vmatpush.msra.mxu2 %v720_v60 }
 0x2b2   :  { %356 = vmatpush.msra.mxu2 %v721_v61 }
 0x2b3   :  { %v289_v63 = vpop.f32.mrf.mxu1 }
 0x2b4   :  { %v290_v1 = vadd.f32 %v289_v63, %v150_v62  ;;  %v731_v63 = vld [vmem:[#allocation5 + $0xb2] ss:$0 sm:$0xff] }
 0x2b5   :  { %v724_v3 = vpop.permute.xlu0 %723 }
 0x2b6   :  { %v296_v4 = vsel %vm292_vm8, %v290_v1, -inf  ;;  %v725_v5 = vunpack.i.l.bf16 %v724_v3  ;;  %v726_v6 = vunpack.i.h.bf16 %v724_v3 }
 0x2b7   :  { %297 = vmax.xlane.f32.xlu2 %v296_v4 }
 0x2b8   :  { %357 = vmatpush.msra.mxu2 %v725_v5  ;;  %v732_v5 = vld [vmem:[#allocation5 + $0xb3] ss:$0 sm:$0xff] }
 0x2ba   :  { %358 = vmatpush.msra.mxu2 %v726_v6 }
 0x2bc   :  { %508 = vmatpush.msrb.mxu2 %v487_v45 }
 0x2be   :  { %509 = vmatpush.msrb.mxu2 %v486_v46 }
 0x2c0   :  { %510 = vmatpush.msrb.mxu2 %v485_v47 }
 0x2c2   :  { %511 = vmatpush.msrb.mxu2 %v484_v48 }
 0x322   :  { %v295_v9 = vpop.xlane.xlu1 %294 }
 0x323   :  { %v299_v11 = vsub.f32 %v287_v57, %v295_v9 }
 0x325   :  { %v301_v12 = vmul.f32 1.442695, %v299_v11 }
 0x327   :  { %743 = vpow2.f32 %v301_v12 }
 0x32a   :  { %v298_v13 = vpop.xlane.xlu2 %297 }
 0x32b   :  { %v300_v14 = vsub.f32 %v290_v1, %v298_v13 }
 0x32d   :  { %v744_v15 = vpop.eup %743  ;;  %v303_v16 = vmul.f32 1.442695, %v300_v14 }
 0x32e   :  { %688 = vmatmul.msk.f32.vlgmr.msra.gmra.mxu2 %vm292_vm8, %v744_v15  ;;  %690 = vmatmul.msk.f32.vlgmr.msra.gmra.mxu3 %vm292_vm8, %v744_v15 }
 0x32f   :  { %745 = vpow2.f32 %v303_v16  ;;  %v540_v16 = vld [vmem:[#allocation5 + $0x78] sm:$0xff] }
 0x330   :  { %555 = vmatpush.xpose.msrb.mxu3 %v540_v16 }
 0x335   :  { %v746_v17 = vpop.eup %745 }
 0x336   :  { %689 = vmatmul.msk.f32.gmra.mxu2 %vm292_vm8, %v746_v17  ;;  %691 = vmatmul.msk.f32.gmra.mxu3 %vm292_vm8, %v746_v17  ;;  %v539_v17 = vld [vmem:[#allocation5 + $0x70] sm:$0xff] }
 0x337   :  { %556 = vmatpush.xpose.msrb.mxu3 %v539_v17  ;;  %v735_v17 = vld [vmem:[#allocation5 + $0xb4] ss:$0 sm:$0xff] }
 0x33b   :  { %557 = vmatpush.xpose.msrb.mxu3 %v538_v18 }
 0x33f   :  { %558 = vmatpush.xpose.msrb.mxu3 %v537_v19 }
 0x3b1   :  { %v383_v20 = vpop.f32.mrf.mxu3  ;;  %v360_v21 = vpop.f32.mrf.mxu2 }
 0x3b2   :  { %747 = vrcp.f32 %v383_v20  ;;  %v733_v20 = vld [vmem:[#allocation5 + $0xa8] ss:$0 sm:$0xff] }
 0x3b8   :  { %v748_v22 = vpop.eup %747 }
 0x3b9   :  { %v386_v23 = vpop.f32.mrf.mxu3  ;;  %v391_v24 = vmul.f32 %v748_v22, %v360_v21  ;;  %v363_v26 = vpop.f32.mrf.mxu2 }
 0x3ba   :  { %749 = vrcp.f32 %v386_v23 }
 0x3bb   :  { %692 = vmatmul.msk.f32.vlgmr.msrb.gmra.mxu0 %vm48_vm0, %v391_v24 }
 0x3c0   :  { %v750_v25 = vpop.eup %749 }
 0x3c1   :  { %v392_v27 = vmul.f32 %v750_v25, %v363_v26 }
 0x3c3   :  { %693 = vmatmul.msk.f32.gmra.mxu0 %vm48_vm0, %v392_v27 }
 0x438   :  { %v421_v29 = vpop.f32.mrf.mxu0 }
 0x439   :  { %v427_v30 = vadd.f32 %v421_v29, %v877_v0 }
 0x43b   :  { %v1008_v31 = vadd.f32 %v730_v28, %v427_v30 }
 0x43d   :  { %v434_v32 = vsel %vm48_vm0, %v1008_v31, 0.0 }
 0x43e   :  { %435 = vadd.xlane.f32.xlu0 %v434_v32 }
 0x440   :  { %v424_v33 = vpop.f32.mrf.mxu0 }
 0x441   :  { %v428_v34 = vadd.f32 %v424_v33, %v881_v2 }
 0x443   :  { %v1013_v35 = vadd.f32 %v730_v28, %v428_v34 }
 0x445   :  { %v437_v36 = vsel %vm48_vm0, %v1013_v35, 0.0 }
 0x446   :  { %438 = vadd.xlane.f32.xlu1 %v437_v36 }
 0x4b1   :  { %v436_v37 = vpop.xlane.xlu0 %435 }
 0x4b2   :  { %v440_v38 = vmul.f32 %v436_v37, %v885_v10 }
 0x4b4   :  { %v442_v0 = vsub.f32 %v1008_v31, %v440_v38 }
 0x4b6   :  { %v444_v39 = vmul.f32 %v442_v0, %v442_v0 }
 0x4b8   :  { %v446_v40 = vsel %vm48_vm0, %v444_v39, 0.0 }
 0x4b9   :  { %447 = vadd.xlane.f32.xlu2 %v446_v40  ;;  %v439_v41 = vpop.xlane.xlu1 %438 }
 0x4ba   :  { %v441_v42 = vmul.f32 %v439_v41, %v885_v10 }
 0x4bc   :  { %v443_v2 = vsub.f32 %v1013_v35, %v441_v42 }
 0x4be   :  { %v445_v43 = vmul.f32 %v443_v2, %v443_v2 }
 0x4c0   :  { %v449_v44 = vsel %vm48_vm0, %v445_v43, 0.0  ;;  %v734_v43 = vld [vmem:[#allocation5 + $0xb7] ss:$0 sm:$0xff] }
 0x4c1   :  { %450 = vadd.xlane.f32.xlu1 %v449_v44 }
 0x52c   :  { %v448_v49 = vpop.xlane.xlu2 %447 }
 0x52d   :  { %v452_v50 = vmul.f32 %v448_v49, %v885_v10 }
 0x52f   :  { %v454_v51 = vadd.f32 1e-05, %v452_v50 }
 0x531   :  { %751 = vrsqrt.f32 %v454_v51  ;;  %vm462_vm10 = vweird.f32 %v454_v51 }
 0x534   :  { %v451_v52 = vpop.xlane.xlu1 %450 }
 0x535   :  { %v453_v53 = vmul.f32 %v451_v52, %v885_v10 }
 0x537   :  { %v752_v54 = vpop.eup %751  ;;  %v455_v55 = vadd.f32 1e-05, %v453_v53 }
 0x538   :  { %v457_v56 = vmul.f32 %v752_v54, %v454_v51  ;;  %vm463_vm9 = vweird.f32 %v752_v54 }
 0x539   :  { %753 = vrsqrt.f32 %v455_v55  ;;  %vm464_vm11 = vmor %vm462_vm10, %vm463_vm9  ;;  %vm472_vm13 = vweird.f32 %v455_v55 }
 0x53a   :  { %v458_v57 = vmul.f32 %v752_v54, %v457_v56 }
 0x53c   :  { %v459_v58 = vmul.f32 0.5, %v458_v57 }
 0x53e   :  { %v460_v59 = vsub.f32 1.5, %v459_v58 }
 0x53f   :  { %v754_v60 = vpop.eup %753 }
 0x540   :  { %v461_v61 = vmul.f32 %v752_v54, %v460_v59  ;;  %v467_v62 = vmul.f32 %v754_v60, %v455_v55  ;;  %vm473_vm12 = vweird.f32 %v754_v60 }
 0x541   :  { %vm474_vm14 = vmor %vm472_vm13, %vm473_vm12 }
 0x542   :  { %v465_v1 = vsel %vm464_vm11, %v752_v54, %v461_v61  ;;  %v468_v3 = vmul.f32 %v754_v60, %v467_v62  ;;  %v622_v61 = vld [vmem:[#allocation5 + $0x90] sm:$0xff]  ;;  %v621_v62 = vld [vmem:[#allocation5 + $0x88] sm:$0xff] }
 0x543   :  { %v476_v4 = vmul.f32 %v465_v1, %v442_v0 }
 0x544   :  { %v469_v6 = vmul.f32 0.5, %v468_v3 }
 0x545   :  { %v479_v7 = vmul.f32 %v731_v63, %v476_v4 }
 0x546   :  { %v470_v8 = vsub.f32 1.5, %v469_v6 }
 0x547   :  { %v482_v9 = vadd.f32 %v732_v5, %v479_v7 }
 0x548   :  { %v471_v11 = vmul.f32 %v754_v60, %v470_v8 }
 0x549   :  { %694 = vmatmul.msk.f32.vlgmr.msrb.gmra.mxu2 %vm48_vm0, %v482_v9 }
 0x54a   :  { %v475_v12 = vsel %vm474_vm14, %v754_v60, %v471_v11 }
 0x54b   :  { %v477_v13 = vmul.f32 %v475_v12, %v443_v2 }
 0x54d   :  { %v480_v14 = vmul.f32 %v731_v63, %v477_v13  ;;  %v620_v63 = vld [vmem:[#allocation5 + $0x80] sm:$0xff] }
 0x54f   :  { %v483_v15 = vadd.f32 %v732_v5, %v480_v14 }
 0x551   :  { %695 = vmatmul.msk.f32.gmra.mxu2 %vm48_vm0, %v483_v15 }
 0x5cc   :  { %v513_v21 = vpop.f32.mrf.mxu2 }
 0x5cd   :  { %v514_v22 = vadd.f32 %v733_v20, %v513_v21  ;;  %v736_v21 = vld [vmem:[#allocation5 + $0xb5] ss:$0 sm:$0xff] }
 0x5cf   :  { %v519_v23 = vmul.f32 %v514_v22, %v514_v22 }
 0x5d1   :  { %v521_v24 = vmul.f32 %v519_v23, %v514_v22 }
 0x5d3   :  { %v523_v25 = vmul.f32 0.044715, %v521_v24 }
 0x5d4   :  { %v516_v26 = vpop.f32.mrf.mxu2 }
 0x5d5   :  { %v525_v27 = vadd.f32 %v523_v25, %v514_v22  ;;  %v517_v28 = vadd.f32 %v733_v20, %v516_v26 }
 0x5d7   :  { %v520_v29 = vmul.f32 %v517_v28, %v517_v28  ;;  %v527_v30 = vmul.f32 0.7978846, %v525_v27 }
 0x5d9   :  { %v522_v32 = vmul.f32 %v520_v29, %v517_v28  ;;  %755 = vtanh.f32 %v527_v30 }
 0x5db   :  { %v524_v33 = vmul.f32 0.044715, %v522_v32 }
 0x5dd   :  { %v526_v34 = vadd.f32 %v524_v33, %v517_v28 }
 0x5df   :  { %v756_v36 = vpop.eup %755  ;;  %v528_v37 = vmul.f32 0.7978846, %v526_v34 }
 0x5e0   :  { %v531_v38 = vadd.f32 1.0, %v756_v36 }
 0x5e1   :  { %757 = vtanh.f32 %v528_v37 }
 0x5e2   :  { %v533_v0 = vmul.f32 0.5, %v531_v38 }
 0x5e4   :  { %v535_v39 = vmul.f32 %v533_v0, %v514_v22 }
 0x5e6   :  { %559 = vmatmul.f32.vlgmr.msrb.gmra.mxu3 %v535_v39 }
 0x5e7   :  { %v758_v40 = vpop.eup %757 }
 0x5e8   :  { %v532_v41 = vadd.f32 1.0, %v758_v40 }
 0x5ea   :  { %v534_v42 = vmul.f32 0.5, %v532_v41 }
 0x5ec   :  { %v536_v2 = vmul.f32 %v534_v42, %v517_v28 }
 0x5ee   :  { %562 = vmatmul.f32.gmra.mxu3 %v536_v2 }
 0x669   :  { %v560_v44 = vpop.f32.mrf.mxu3 }
 0x66a   :  { %v561_v45 = vadd.f32 %v734_v43, %v560_v44 }
 0x66c   :  { %v566_v46 = vadd.f32 %v561_v45, %v1008_v31 }
 0x66e   :  { %v570_v47 = vsel %vm48_vm0, %v566_v46, 0.0 }
 0x66f   :  { %571 = vadd.xlane.f32.xlu2 %v570_v47 }
 0x671   :  { %v563_v48 = vpop.f32.mrf.mxu3 }
 0x672   :  { %v564_v49 = vadd.f32 %v734_v43, %v563_v48 }
 0x674   :  { %v567_v50 = vadd.f32 %v564_v49, %v1013_v35  ;;  %v623_v35 = vld [vmem:[#allocation5 + $0x98] sm:$0xff] }
 0x675   :  { %642 = vmatpush.msra.mxu0 %v623_v35 }
 0x676   :  { %v573_v51 = vsel %vm48_vm0, %v567_v50, 0.0 }
 0x677   :  { %574 = vadd.xlane.f32.xlu1 %v573_v51  ;;  %643 = vmatpush.msra.mxu0 %v622_v61 }
 0x679   :  { %644 = vmatpush.msra.mxu0 %v621_v62 }
 0x67b   :  { %645 = vmatpush.msra.mxu0 %v620_v63 }
 0x6e2   :  { %v572_v52 = vpop.xlane.xlu2 %571 }
 0x6e3   :  { %v576_v53 = vmul.f32 %v572_v52, %v885_v10 }
 0x6e5   :  { %v578_v54 = vsub.f32 %v566_v46, %v576_v53 }
 0x6e7   :  { %v580_v55 = vmul.f32 %v578_v54, %v578_v54 }
 0x6e9   :  { %v582_v56 = vsel %vm48_vm0, %v580_v55, 0.0 }
 0x6ea   :  { %583 = vadd.xlane.f32.xlu2 %v582_v56  ;;  %v575_v57 = vpop.xlane.xlu1 %574 }
 0x6eb   :  { %v577_v31 = vmul.f32 %v575_v57, %v885_v10 }
 0x6ed   :  { %v579_v58 = vsub.f32 %v567_v50, %v577_v31 }
 0x6ef   :  { %v581_v59 = vmul.f32 %v579_v58, %v579_v58 }
 0x6f1   :  { %v585_v60 = vsel %vm48_vm0, %v581_v59, 0.0 }
 0x6f2   :  { %586 = vadd.xlane.f32.xlu1 %v585_v60 }
 0x75d   :  { %v584_v1 = vpop.xlane.xlu2 %583 }
 0x75e   :  { %v588_v3 = vmul.f32 %v584_v1, %v885_v10 }
 0x760   :  { %v590_v4 = vadd.f32 1e-05, %v588_v3 }
 0x762   :  { %759 = vrsqrt.f32 %v590_v4  ;;  %vm598_vm1 = vweird.f32 %v590_v4 }
 0x765   :  { %v587_v5 = vpop.xlane.xlu1 %586 }
 0x766   :  { %v589_v6 = vmul.f32 %v587_v5, %v885_v10 }
 0x768   :  { %v760_v7 = vpop.eup %759  ;;  %v591_v8 = vadd.f32 1e-05, %v589_v6 }
 0x769   :  { %v593_v9 = vmul.f32 %v760_v7, %v590_v4  ;;  %vm599_vm15 = vweird.f32 %v760_v7 }
 0x76a   :  { %761 = vrsqrt.f32 %v591_v8  ;;  %vm600_vm2 = vmor %vm598_vm1, %vm599_vm15  ;;  %vm608_vm4 = vweird.f32 %v591_v8 }
 0x76b   :  { %v594_v11 = vmul.f32 %v760_v7, %v593_v9 }
 0x76d   :  { %v595_v12 = vmul.f32 0.5, %v594_v11 }
 0x76f   :  { %v596_v13 = vsub.f32 1.5, %v595_v12 }
 0x770   :  { %v762_v14 = vpop.eup %761 }
 0x771   :  { %v597_v15 = vmul.f32 %v760_v7, %v596_v13  ;;  %v603_v16 = vmul.f32 %v762_v14, %v591_v8  ;;  %vm609_vm3 = vweird.f32 %v762_v14 }
 0x772   :  { %vm610_vm5 = vmor %vm608_vm4, %vm609_vm3 }
 0x773   :  { %v601_v18 = vsel %vm600_vm2, %v760_v7, %v597_v15  ;;  %v604_v19 = vmul.f32 %v762_v14, %v603_v16 }
 0x774   :  { %v612_v20 = vmul.f32 %v601_v18, %v578_v54 }
 0x775   :  { %v605_v22 = vmul.f32 0.5, %v604_v19 }
 0x776   :  { %v615_v10 = vmul.f32 %v735_v17, %v612_v20 }
 0x777   :  { %v606_v23 = vsub.f32 1.5, %v605_v22 }
 0x778   :  { %v618_v24 = vadd.f32 %v736_v21, %v615_v10 }
 0x779   :  { %v607_v25 = vmul.f32 %v762_v14, %v606_v23 }
 0x77a   :  { %696 = vmatmul.msk.f32.vlgmr.msra.gmra.mxu0 %vm48_vm0, %v618_v24 }
 0x77b   :  { %v611_v26 = vsel %vm610_vm5, %v762_v14, %v607_v25 }
 0x77c   :  { %v613_v27 = vmul.f32 %v611_v26, %v579_v58 }
 0x77e   :  { %v616_v28 = vmul.f32 %v735_v17, %v613_v27 }
 0x780   :  { %v619_v29 = vadd.f32 %v736_v21, %v616_v28 }
 0x782   :  { %697 = vmatmul.msk.f32.gmra.mxu0 %vm48_vm0, %v619_v29 }
 0x7f7   :  { %v647_v30 = vpop.f32.mrf.mxu0 }
 0x7f8   :  { %654 = vst.msk [vmem:[#allocation7] sm:$0xff] %vm653_vm6, %v647_v30 }
 0x7ff   :  { %v650_v32 = vpop.f32.mrf.mxu0 }
 0x800   :  { %655 = vst.msk [vmem:[#allocation7 + $0x8] sm:$0xff] %vm653_vm6, %v650_v32 }
 0x801   :  { %668 = dma.vmem_to_hbm [thread:$0]  %s661_s23, 256, %s663_s26, [#allocation4], %s842_s17, %s842_s17, %s843_s18  }
 0x802   :  { %839 = dma.done.wait [#allocation4], 256  }
 0x803   :  { %840 = vsyncadd [#allocation4], 4294967040 }
 0x804   :  { %673 = vsyncpa [#allocation3], 1 }
 0x805   :  { %674 = vsyncpa [#allocation6], 1 }
 0x806   :  { %675 = vsyncpa [#allocation4], 1 }

</bundles_post_ra>
